<compile_context>
chip_gen: v5e
topology: v5e:2x2
jax: 0.10.0
libtpu: 0.0.40
codegen_flags: <defaults>
</compile_context>

<pallas_src>
import functools

import jax
import jax.numpy as jnp
from jax.experimental import pallas as pl
from jax.experimental.pallas import tpu as pltpu


def _channel_reduce_kernel(x_ref, avg_ref, max_ref, sum_sc, max_sc, *,
                           num_channels):
    """Running mean / max over the channel axis.

    x_ref:            (B, Ct, HW) input block (native dtype)
    avg_ref/max_ref:  (B, HW) f32 outputs (mean / max over all C)
    sum_sc/max_sc:    (B, HW) f32 VMEM scratch accumulators
    """
    c = pl.program_id(0)

    @pl.when(c == 0)
    def _init():
        sum_sc[...] = jnp.zeros_like(sum_sc)
        max_sc[...] = jnp.full_like(max_sc, -jnp.inf)

    x = x_ref[...]                       # keep native dtype in vregs
    sum_sc[...] += jnp.sum(x.astype(jnp.float32), axis=1)
    max_sc[...] = jnp.maximum(max_sc[...],
                              jnp.max(x, axis=1).astype(jnp.float32))

    @pl.when(c == pl.num_programs(0) - 1)
    def _finalize():
        avg_ref[...] = sum_sc[...] * (1.0 / num_channels)
        max_ref[...] = max_sc[...]


def _conv_sigmoid_kernel(pa_ref, pm_ref, w_ref, o_ref, *,
                         height, width, ksize):
    """sigmoid(conv2d(cat([avg, max], 1), w)) on pre-padded pooled maps.

    pa_ref/pm_ref: (B, H+2p, W+2p) f32 zero-padded pooled maps (VMEM)
    w_ref:         (2*k*k,) f32 in SMEM, layout [in_chan, ky, kx]
    o_ref:         (B, H, W) output
    """
    xa = pa_ref[...]
    xm = pm_ref[...]
    kk = ksize * ksize

    acc = jnp.zeros(o_ref.shape, jnp.float32)
    for dy in range(ksize):
        for dx in range(ksize):
            wa = w_ref[dy * ksize + dx]
            wm = w_ref[kk + dy * ksize + dx]
            acc = acc + wa * xa[:, dy:dy + height, dx:dx + width]
            acc = acc + wm * xm[:, dy:dy + height, dx:dx + width]

    # sigmoid written explicitly (exp runs on the EUP slot).
    o_ref[...] = (1.0 / (1.0 + jnp.exp(-acc))).astype(o_ref.dtype)


def _pick_channel_tile(B, C, HW, itemsize, budget_bytes=4 * 1024 * 1024):
    """Largest channel tile that (a) divides C, (b) is a multiple of 8 (the
    sublane tiling requirement on the second-to-last block dim) or equals C,
    and (c) keeps one (B, Ct, HW) block under `budget_bytes` so the
    double-buffered pipeline stays within the scoped-VMEM default."""
    if B * C * HW * itemsize <= budget_bytes:
        return C
    if C % 8 != 0:
        return C            # must use the full extent if C isn't sublane-aligned
    best = 8
    tc = 8
    while tc < C:
        if C % tc == 0 and B * tc * HW * itemsize <= budget_bytes:
            best = tc
        tc += 8
    return best


def spatial_attention(x, conv_w, *, kernel_size=7, channel_tile=None):
    """SpatialAttention.forward.

    x:      (B, C, H, W)
    conv_w: (1, 2, kernel_size, kernel_size)  Conv2d weight (bias=False)
    returns (B, 1, H, W) = sigmoid(conv(cat(mean_c(x), max_c(x))))
    """
    B, C, H, W = x.shape
    assert conv_w.shape == (1, 2, kernel_size, kernel_size), conv_w.shape
    padding = 3 if kernel_size == 7 else 1
    HW = H * W

    x_flat = x.reshape(B, C, HW)
    if channel_tile is None:
        channel_tile = _pick_channel_tile(B, C, HW, x.dtype.itemsize)
    assert C % channel_tile == 0, (C, channel_tile)

    # --- Stage 1: streamed channel-wise mean / max -> (B, HW) each ---
    avg, mx = pl.pallas_call(
        functools.partial(_channel_reduce_kernel, num_channels=C),
        out_shape=(
            jax.ShapeDtypeStruct((B, HW), jnp.float32),
            jax.ShapeDtypeStruct((B, HW), jnp.float32),
        ),
        grid_spec=pltpu.PrefetchScalarGridSpec(
            num_scalar_prefetch=0,
            grid=(C // channel_tile,),
            in_specs=[
                pl.BlockSpec((B, channel_tile, HW), lambda c: (0, c, 0)),
            ],
            out_specs=[
                pl.BlockSpec((B, HW), lambda c: (0, 0)),
                pl.BlockSpec((B, HW), lambda c: (0, 0)),
            ],
            scratch_shapes=[
                pltpu.VMEM((B, HW), jnp.float32),
                pltpu.VMEM((B, HW), jnp.float32),
            ],
        ),
        compiler_params=pltpu.CompilerParams(
            dimension_semantics=("arbitrary",)),
    )(x_flat)

    # --- Stage 2: 7x7 conv (2 -> 1 channels) + sigmoid on tiny pooled maps ---
    pad_cfg = ((0, 0), (padding, padding), (padding, padding))
    avg_pad = jnp.pad(avg.reshape(B, H, W), pad_cfg)
    max_pad = jnp.pad(mx.reshape(B, H, W), pad_cfg)
    w_flat = conv_w.reshape(2 * kernel_size * kernel_size).astype(jnp.float32)

    out = pl.pallas_call(
        functools.partial(_conv_sigmoid_kernel, height=H, width=W,
                          ksize=kernel_size),
        out_shape=jax.ShapeDtypeStruct((B, H, W), x.dtype),
        in_specs=[
            pl.BlockSpec(memory_space=pltpu.MemorySpace.VMEM),
            pl.BlockSpec(memory_space=pltpu.MemorySpace.VMEM),
            pl.BlockSpec(memory_space=pltpu.MemorySpace.SMEM),
        ],
        out_specs=pl.BlockSpec(memory_space=pltpu.MemorySpace.VMEM),
    )(avg_pad, max_pad, w_flat)

    return out.reshape(B, 1, H, W)


def _reference(x, conv_w):
    # Pure-JAX reference of the PyTorch forward.
    xf = x.astype(jnp.float32)
    avg = jnp.mean(xf, axis=1, keepdims=True)
    mx = jnp.max(xf, axis=1, keepdims=True)
    cat = jnp.concatenate([avg, mx], axis=1)           # (B, 2, H, W)
    pad = conv_w.shape[-1] // 2
    out = jax.lax.conv_general_dilated(
        cat, conv_w.astype(jnp.float32),
        window_strides=(1, 1), padding=((pad, pad), (pad, pad)),
        dimension_numbers=("NCHW", "OIHW", "NCHW"))
    return jax.nn.sigmoid(out).astype(x.dtype)


if __name__ == "__main__":
    B, C, H, W = 2, 16, 16, 16
    ksize = 7

    key = jax.random.PRNGKey(0)
    kx, kw = jax.random.split(key)
    x = jax.random.normal(kx, (B, C, H, W), dtype=jnp.float32)
    # nn.Conv2d(2, 1, 7, padding=3, bias=False).weight -> (1, 2, 7, 7)
    conv_w = jax.random.normal(kw, (1, 2, ksize, ksize), dtype=jnp.float32) * 0.1

    # channel_tile=8 -> grid of 2 reduction steps, exercising the accumulator path.
    out = spatial_attention(x, conv_w, kernel_size=ksize, channel_tile=8)
    jax.block_until_ready(out)

    ref = _reference(x, conv_w)
    assert out.shape == (B, 1, H, W), out.shape
    assert jnp.allclose(out, ref, atol=1e-5, rtol=1e-5), float(
        jnp.max(jnp.abs(out - ref)))

    print("KERNEL_OK")
</pallas_src>

<mosaic_0001>
module attributes {stable_mosaic.version = 11 : i64} {
  func.func @_channel_reduce_kernel(%arg0: i32, %arg1: memref<2x8x256xf32, #tpu.memory_space<vmem>>, %arg2: memref<2x256xf32, #tpu.memory_space<vmem>>, %arg3: memref<2x256xf32, #tpu.memory_space<vmem>>, %arg4: memref<2x256xf32, #tpu.memory_space<vmem>>, %arg5: memref<2x256xf32, #tpu.memory_space<vmem>>) attributes {dimension_semantics = [#tpu.dimension_semantics<arbitrary>], iteration_bounds = array<i64: 2>, scalar_prefetch = 0 : i64, scratch_operands = 2 : i64, tpu.core_type = #tpu.core_type<tc>, window_params = [{transform_indices = @transform_0, window_bounds = array<i64: 2, 8, 256>}, {pipeline_mode = #tpu.pipeline_mode<synchronous>, transform_indices = @transform_1, window_bounds = array<i64: 2, 256>}, {pipeline_mode = #tpu.pipeline_mode<synchronous>, transform_indices = @transform_2, window_bounds = array<i64: 2, 256>}]} {
    %c0_i32 = arith.constant 0 : i32
    %0 = arith.cmpi eq, %arg0, %c0_i32 : i32
    %1 = arith.extui %0 : i1 to i32
    %c0_i32_0 = arith.constant 0 : i32
    %2 = arith.cmpi ne, %1, %c0_i32_0 : i32
    scf.if %2 {
      %cst_13 = arith.constant 0.000000e+00 : f32
      %15 = vector.broadcast %cst_13 : f32 to vector<2x256xf32>
      %c0_14 = arith.constant 0 : index
      %c0_15 = arith.constant 0 : index
      %16 = vector.load %arg4[%c0_14, %c0_15] : memref<2x256xf32, #tpu.memory_space<vmem>>, vector<2x256xf32>
      tpu.vector_store %arg4[%c0_14, %c0_15], %15 {strides = array<i32>} : memref<2x256xf32, #tpu.memory_space<vmem>>, vector<2x256xf32>,
      %cst_16 = arith.constant 0xFF800000 : f32
      %17 = vector.broadcast %cst_16 : f32 to vector<2x256xf32>
      %c0_17 = arith.constant 0 : index
      %c0_18 = arith.constant 0 : index
      %18 = vector.load %arg5[%c0_17, %c0_18] : memref<2x256xf32, #tpu.memory_space<vmem>>, vector<2x256xf32>
      tpu.vector_store %arg5[%c0_17, %c0_18], %17 {strides = array<i32>} : memref<2x256xf32, #tpu.memory_space<vmem>>, vector<2x256xf32>,
    } else {
    }
    %c0 = arith.constant 0 : index
    %c0_1 = arith.constant 0 : index
    %c0_2 = arith.constant 0 : index
    %3 = vector.load %arg1[%c0, %c0_1, %c0_2] : memref<2x8x256xf32, #tpu.memory_space<vmem>>, vector<2x8x256xf32>
    %c0_3 = arith.constant 0 : index
    %c0_4 = arith.constant 0 : index
    %4 = vector.load %arg4[%c0_3, %c0_4] : memref<2x256xf32, #tpu.memory_space<vmem>>, vector<2x256xf32>
    %cst = arith.constant dense<0.000000e+00> : vector<2x256xf32>
    %5 = vector.multi_reduction <add>, %3, %cst [1] : vector<2x8x256xf32> to vector<2x256xf32>
    %6 = arith.addf %4, %5 : vector<2x256xf32>
    %c0_5 = arith.constant 0 : index
    %c0_6 = arith.constant 0 : index
    %7 = vector.load %arg4[%c0_5, %c0_6] : memref<2x256xf32, #tpu.memory_space<vmem>>, vector<2x256xf32>
    tpu.vector_store %arg4[%c0_5, %c0_6], %6 {strides = array<i32>} : memref<2x256xf32, #tpu.memory_space<vmem>>, vector<2x256xf32>,
    %c0_7 = arith.constant 0 : index
    %c0_8 = arith.constant 0 : index
    %8 = vector.load %arg5[%c0_7, %c0_8] : memref<2x256xf32, #tpu.memory_space<vmem>>, vector<2x256xf32>
    %cst_9 = arith.constant dense<0xFF800000> : vector<2x256xf32>
    %9 = vector.multi_reduction <maximumf>, %3, %cst_9 [1] : vector<2x8x256xf32> to vector<2x256xf32>
    %10 = arith.maximumf %8, %9 : vector<2x256xf32>
    %c0_10 = arith.constant 0 : index
    %c0_11 = arith.constant 0 : index
    %11 = vector.load %arg5[%c0_10, %c0_11] : memref<2x256xf32, #tpu.memory_space<vmem>>, vector<2x256xf32>
    tpu.vector_store %arg5[%c0_10, %c0_11], %10 {strides = array<i32>} : memref<2x256xf32, #tpu.memory_space<vmem>>, vector<2x256xf32>,
    %c1_i32 = arith.constant 1 : i32
    %12 = arith.cmpi eq, %arg0, %c1_i32 : i32
    %13 = arith.extui %12 : i1 to i32
    %c0_i32_12 = arith.constant 0 : i32
    %14 = arith.cmpi ne, %13, %c0_i32_12 : i32
    scf.if %14 {
      %c0_13 = arith.constant 0 : index
      %c0_14 = arith.constant 0 : index
      %15 = vector.load %arg4[%c0_13, %c0_14] : memref<2x256xf32, #tpu.memory_space<vmem>>, vector<2x256xf32>
      %cst_15 = arith.constant 6.250000e-02 : f32
      %16 = vector.broadcast %cst_15 : f32 to vector<2x256xf32>
      %17 = arith.mulf %15, %16 : vector<2x256xf32>
      %c0_16 = arith.constant 0 : index
      %c0_17 = arith.constant 0 : index
      %18 = vector.load %arg2[%c0_16, %c0_17] : memref<2x256xf32, #tpu.memory_space<vmem>>, vector<2x256xf32>
      tpu.vector_store %arg2[%c0_16, %c0_17], %17 {strides = array<i32>} : memref<2x256xf32, #tpu.memory_space<vmem>>, vector<2x256xf32>,
      %c0_18 = arith.constant 0 : index
      %c0_19 = arith.constant 0 : index
      %19 = vector.load %arg5[%c0_18, %c0_19] : memref<2x256xf32, #tpu.memory_space<vmem>>, vector<2x256xf32>
      %c0_20 = arith.constant 0 : index
      %c0_21 = arith.constant 0 : index
      %20 = vector.load %arg3[%c0_20, %c0_21] : memref<2x256xf32, #tpu.memory_space<vmem>>, vector<2x256xf32>
      tpu.vector_store %arg3[%c0_20, %c0_21], %19 {strides = array<i32>} : memref<2x256xf32, #tpu.memory_space<vmem>>, vector<2x256xf32>,
    } else {
    }
    return
  }
  func.func @transform_0(%arg0: i32) -> (i32, i32, i32) {
    %c0_i32 = arith.constant 0 : i32
    %c0_i32_0 = arith.constant 0 : i32
    %c0_i32_1 = arith.constant 0 : i32
    return %c0_i32, %arg0, %c0_i32_0 : i32, i32, i32
  }
  func.func @transform_1(%arg0: i32) -> (i32, i32) {
    %c0_i32 = arith.constant 0 : i32
    %c0_i32_0 = arith.constant 0 : i32
    %c0_i32_1 = arith.constant 0 : i32
    return %c0_i32, %c0_i32_0 : i32, i32
  }
  func.func @transform_2(%arg0: i32) -> (i32, i32) {
    %c0_i32 = arith.constant 0 : i32
    %c0_i32_0 = arith.constant 0 : i32
    %c0_i32_1 = arith.constant 0 : i32
    return %c0_i32, %c0_i32_0 : i32, i32
  }
}

</mosaic_0001>

<bundles_post_ra>
// kernel: tpu_custom_call.1
= control target key start
LH: loop header
LB: loop body
LE: loop exit
PB: predicated region body
PF: predicated region fallthrough
CT: control target
= control target key end

     0   :  { %8 = vsyncpa [#allocation5], 0  ;;  %s679_s0 = inlined_call_operand.hbm [shape: f32[2,16,256], index: 0, kind: input, shape index: {}]   ;;  %s680_s1 = inlined_call_operand.hbm [shape: f32[2,256], index: 1, kind: output, shape index: {0}]   ;;  %s681_s2 = inlined_call_operand.hbm [shape: f32[2,256], index: 2, kind: output, shape index: {1}]  }
   0x1   :  { %10 = vsyncpa [#allocation5 + $0x1], 0 }
   0x2   :  { %11 = vsyncpa [#allocation6], 0 }
   0x3   :  { %12 = vsyncpa [#allocation9], 0  ;;  %s573_s9 = smov 0   ;;  %s575_s10 = smov 0  }
   0x4   :  { %s577_s11 = smov 0   ;;  %s579_s12 = smov 0  }
   0x5 LB: > { %s592_s13 = sadd.s32 4294967295, %s549_s12   ;;  %s595_s14 = sadd.s32 1, %s549_s12   ;;  %s549_s12 = sphi %s579_s12, %s688_s12   ;;  %s545_s11 = sphi %s577_s11, %s687_s11   ;;  %s541_s10 = sphi %s575_s10, %s686_s10   ;;  %s537_s9 = sphi %s573_s9, %s685_s9  }
   0x6   : > { %s22_s15 = ssub.s32 %s549_s12, %s595_s14  ;;  %s25_s16 = sadd.s32 1, %s545_s11 }
   0x7   : > { %p23_p0 = scmp.eq.s32.totalorder %s22_s15, 0  ;;  %p32_p1 = scmp.ne.s32.totalorder %s545_s11, %s541_s10 }
   0x8   : > { %p33_p2 = scmp.eq.s32.totalorder %s549_s12, 0  ;;  %p38_p3 = scmp.ne.s32.totalorder %s541_s10, %s537_s9 }
   0x9   : > { %s605_s17 = scalar_select %p23_p0, %s545_s11, %s25_s16  }
   0xa   : > { %p607_p4 = por %p33_p2, %p32_p1  ;;  %p39_p5 = scmp.eq.s32.totalorder %s592_s13, 0 }
   0xb   : > { %p377_p6 = scmp.lt.s32.totalorder %s549_s12, 2  ;;  %s104_s20 = sand.u32 1, %s545_s11  }
   0xc   : > { %p613_p7 = por %p39_p5, %p38_p3  ;;  %s349_s21 = sshll.u32 %s104_s20, 5 }
   0xd   : > { %s362_s22 = sshll.u32 %s549_s12, 4  ;;  %s108_s26 = scalar_lea.vmem [#allocation4], %s349_s21 }
   0xe   : > { %s113_s25 = scalar_lea.hbm %s679_s0, %s362_s22  ;;  %s116_s27 = sshll.u32 %s108_s26, 4  ;;  %s117_s27 = int_to_ptr.vmem [resolvable:$true] %s116_s27 }
   0xf   : > { %s114_s28 = sshll.u32 %s113_s25, 4  ;;  %p624_p8 = pnand %p377_p6, %p607_p4  ;;  %s115_s28 = int_to_ptr.hbm [resolvable:$true] %s114_s28 }
  0x10   : > { %s105_s30 = scalar_lea.sflag [#allocation5], %s104_s20  ;;  %s421_s3 = sshra.s32 %s115_s28, 4  ;;  %s422_s3 = int_to_ptr.hbm [resolvable:$true] %s421_s3 }
  0x11   : > { %s423_s4 = scalar_lea.hbm %s422_s3, 32  ;;  %p425_p10 = pneg %p624_p8 }
  0x12   : > { %p424_p9 = scmp.ne.s32.totalorder %s422_s3, %s423_s4  ;;  %s428_s7 = scalar_lea.hbm %s679_s0, 64 }
  0x13   : > { %p429_p13 = scmp.lt.s32.totalorder %s422_s3, %s679_s0  ;;  %p430_p0 = scmp.lt.s32.totalorder %s428_s7, %s423_s4 }
  0x14   : > { %p426_p11 = pnand %p425_p10, %p424_p9 }
  0x15   : > { %p431_p1 = por %p430_p0, %p429_p13 }
  0x16   : > { %p427_p12 = pneg %p426_p11 }
  0x18   : > { %p432_p2 = pnand %p431_p1, %p427_p12 }
  0x1a   : > { %435 = shalt.err (!%p432_p2)
}
  0x1b   : > { %s551_s15 = smov 512   ;;  %s552_s16 = smov 256  }
  0x1c   : > { %s553_s18 = smov 16   ;;  %p352_p3 = scmp.ge.s32.totalorder %s549_s12, 1 }
  0x1d   : > { %376 = dma.hbm_to_vmem [thread:$0]  (!%p624_p8), %s115_s28, 512, %s117_s27, %s105_s30, %s551_s15, %s552_s16, %s553_s18  }
  0x1e   : > { %p124_p4 = scmp.lt.s32.totalorder %s549_s12, 3 }
  0x20   : > { %p125_p5 = pnand %p352_p3, %p124_p4 }
  0x21   : > { %s130_s20 = sand.u32 (!%p125_p5), 1, %s541_s10  }
  0x22   : > { %128 = sbr.rel (%p125_p5) target bundleno = 96 (0x60), region = 24  ;;  %s353_s21 = sshll.u32 (!%p125_p5), %s130_s20, 5 }
  0x23   : > { %s131_s22 = scalar_lea.sflag (!%p125_p5), [#allocation5], %s130_s20  ;;  %s134_s23 = scalar_lea.vmem (!%p125_p5), [#allocation4], %s353_s21 }
  0x27   : > { %524 = dma.done.wait (%p613_p7), %s131_s22, 512  }
  0x28   : > { %526 = vsyncadd (%p613_p7), %s131_s22, 4294966784  ;;  %p354_p6 = scmp.ne.s32.totalorder %s592_s13, 0 }
  0x2a   : > { %154 = sbr.rel (%p354_p6) target bundleno = 50 (0x32), region = 32 }
  0x2f   : > { %v554_v0 = vmov 0.0   ;;  %v555_v1 = vmov -inf  }
  0x30   : > { %155 = vst [vmem:[#allocation2] sm:$0xf] %v554_v0 }
  0x31   : > { %156 = vst [vmem:[#allocation3] sm:$0xf] %v555_v1 }
  0x32 PF: > { %v157_v2 = vld [vmem:[%s134_s23] sm:$0xff]  ;;  %v158_v3 = vld [vmem:[%s134_s23 + $0x8] sm:$0xff]  ;;  %v159_v4 = vld [vmem:[%s134_s23 + $0x10] sm:$0xff]  ;;  %vm192_vm0 = vcmask 1041408   ;;  %vm200_vm1 = vcmask 1041409   ;;  %vm202_vm2 = vcmask 1043459  }
  0x33   : > { %v160_v5 = vld [vmem:[%s134_s23 + $0x18] sm:$0xff]  ;;  %v162_v6 = vrot.slane %v157_v2, 4  ;;  %v168_v7 = vrot.slane %v158_v3, 4  ;;  %v174_v8 = vrot.slane %v159_v4, 4  ;;  %vm204_vm3 = vcmask 1045509   ;;  %p355_p7 = scmp.ne.s32.totalorder %s592_s13, 1 }
  0x34   : > { %v180_v9 = vrot.slane %v160_v5, 4  ;;  %vm206_vm4 = vcmask 1047559  }
  0x35   : > { %v163_v10 = vadd.f32 %v162_v6, %v157_v2  ;;  %v169_v11 = vadd.f32 %v168_v7, %v158_v3  ;;  %v175_v12 = vadd.f32 %v174_v8, %v159_v4  ;;  %v213_v13 = vmax.f32 %v157_v2, %v162_v6 }
  0x36   : > { %v181_v14 = vadd.f32 %v180_v9, %v160_v5  ;;  %v219_v15 = vmax.f32 %v158_v3, %v168_v7  ;;  %v225_v16 = vmax.f32 %v159_v4, %v174_v8  ;;  %v231_v17 = vmax.f32 %v160_v5, %v180_v9 }
  0x37   : > { %v164_v18 = vrot.slane %v163_v10, 2  ;;  %v170_v19 = vrot.slane %v169_v11, 2  ;;  %v176_v20 = vrot.slane %v175_v12, 2  ;;  %v214_v21 = vrot.slane %v213_v13, 2  ;;  %v161_v62 = vld [vmem:[#allocation2] sm:$0xf] }
  0x38   : > { %v182_v22 = vrot.slane %v181_v14, 2  ;;  %v220_v23 = vrot.slane %v219_v15, 2  ;;  %v226_v24 = vrot.slane %v225_v16, 2  ;;  %v232_v25 = vrot.slane %v231_v17, 2  ;;  %v211_v0 = vld [vmem:[#allocation3] sm:$0xf] }
  0x39   : > { %v165_v26 = vadd.f32 %v164_v18, %v163_v10  ;;  %v171_v27 = vadd.f32 %v170_v19, %v169_v11  ;;  %v177_v28 = vadd.f32 %v176_v20, %v175_v12  ;;  %v215_v29 = vmax.f32 %v213_v13, %v214_v21 }
  0x3a   : > { %v183_v30 = vadd.f32 %v182_v22, %v181_v14  ;;  %v221_v31 = vmax.f32 %v219_v15, %v220_v23  ;;  %v227_v32 = vmax.f32 %v225_v16, %v226_v24  ;;  %v233_v33 = vmax.f32 %v231_v17, %v232_v25 }
  0x3b   : > { %v166_v34 = vrot.slane %v165_v26, 1  ;;  %v172_v35 = vrot.slane %v171_v27, 1  ;;  %v178_v36 = vrot.slane %v177_v28, 1  ;;  %v216_v37 = vrot.slane %v215_v29, 1 }
  0x3c   : > { %v184_v38 = vrot.slane %v183_v30, 1  ;;  %v222_v39 = vrot.slane %v221_v31, 1  ;;  %v228_v40 = vrot.slane %v227_v32, 1  ;;  %v234_v41 = vrot.slane %v233_v33, 1 }
  0x3d   : > { %v167_v42 = vadd.f32 %v166_v34, %v165_v26  ;;  %v173_v43 = vadd.f32 %v172_v35, %v171_v27  ;;  %v179_v44 = vadd.f32 %v178_v36, %v177_v28  ;;  %v217_v45 = vmax.f32 %v215_v29, %v216_v37 }
  0x3e   : > { %v185_v46 = vadd.f32 %v184_v38, %v183_v30  ;;  %v223_v47 = vmax.f32 %v221_v31, %v222_v39  ;;  %v229_v48 = vmax.f32 %v227_v32, %v228_v40  ;;  %v235_v49 = vmax.f32 %v233_v33, %v234_v41 }
  0x3f   : > { %v190_v50 = vrot.slane %v173_v43, 6 }
  0x40   : > { %v191_v51 = vrot.slane %v185_v46, 6  ;;  %v240_v52 = vrot.slane %v223_v47, 6  ;;  %v241_v53 = vrot.slane %v235_v49, 6 }
  0x41   : > { %v193_v54 = vsel %vm192_vm0, %v167_v42, %v190_v50 }
  0x42   : > { %v194_v55 = vsel %vm192_vm0, %v179_v44, %v191_v51  ;;  %v242_v56 = vsel %vm192_vm0, %v217_v45, %v240_v52  ;;  %v243_v57 = vsel %vm192_vm0, %v229_v48, %v241_v53 }
  0x43   : > { %v199_v58 = vrot.slane %v194_v55, 7  ;;  %v246_v59 = vrot.slane %v243_v57, 7 }
  0x45   : > { %v201_v60 = vsel %vm200_vm1, %v199_v58, %v193_v54  ;;  %v247_v61 = vsel %vm200_vm1, %v246_v59, %v242_v56 }
  0x46   : > { %v203_v63 = vsel %vm202_vm2, %v199_v58, %v201_v60  ;;  %v248_v1 = vsel %vm202_vm2, %v246_v59, %v247_v61 }
  0x47   : > { %v205_v2 = vsel %vm204_vm3, %v199_v58, %v203_v63  ;;  %v249_v3 = vsel %vm204_vm3, %v246_v59, %v248_v1 }
  0x48   : > { %v207_v4 = vsel %vm206_vm4, %v199_v58, %v205_v2  ;;  %v250_v5 = vsel %vm206_vm4, %v246_v59, %v249_v3  ;;  %257 = sbr.rel (%p355_p7) target bundleno = 86 (0x56), region = 36 }
  0x49   : > { %v209_v6 = vadd.f32 %v207_v4, %v161_v62  ;;  %v252_v7 = vmax.f32 %v211_v0, %v250_v5 }
  0x4b   : > { %210 = vst [vmem:[#allocation2] sm:$0xf] %v209_v6 }
  0x4c   : > { %253 = vst [vmem:[#allocation3] sm:$0xf] %v252_v7 }
  0x52   : > { %v258_v8 = vld [vmem:[#allocation2] sm:$0xf] }
  0x53   : > { %v261_v9 = vld [vmem:[#allocation3] sm:$0xf]  ;;  %v259_v10 = vmul.f32 0.0625, %v258_v8 }
  0x54   : > { %262 = vst [vmem:[#allocation8] sm:$0xf] %v261_v9 }
  0x55   : > { %260 = vst [vmem:[#allocation7] sm:$0xf] %v259_v10 }
  0x56 PF: > { %p378_p8 = scmp.eq.s32.totalorder %s592_s13, 1  ;;  %s556_s12 = smov [#allocation7]  }
  0x57   : > { %s269_s19 = sshll.u32 %s556_s12, 4  ;;  %s271_s26 = sshll.u32 %s680_s1, 4  ;;  %s270_s19 = int_to_ptr.vmem [resolvable:$true] %s269_s19  ;;  %s272_s26 = int_to_ptr.hbm [resolvable:$true] %s271_s26 }
  0x58   : > { %366 = dma.vmem_to_hbm [thread:$0]  (%p378_p8), %s270_s19, 64, %s272_s26, [#allocation6]  }
  0x59   : > { %s283_s29 = sshll.u32 %s681_s2, 4  ;;  %s557_s30 = smov [#allocation8]   ;;  %s284_s29 = int_to_ptr.hbm [resolvable:$true] %s283_s29 }
  0x5a   : > { %s281_s3 = sshll.u32 %s557_s30, 4  ;;  %s282_s3 = int_to_ptr.vmem [resolvable:$true] %s281_s3 }
  0x5b   : > { %368 = dma.vmem_to_hbm [thread:$0]  (%p378_p8), %s282_s3, 64, %s284_s29, [#allocation9]  }
  0x5c   : > { %528 = dma.done.wait (%p378_p8), [#allocation6], 64  }
  0x5d   : > { %530 = vsyncadd (%p378_p8), [#allocation6], 4294967232 }
  0x5e   : > { %532 = dma.done.wait (%p378_p8), [#allocation9], 64  }
  0x5f   : > { %534 = vsyncadd (%p378_p8), [#allocation9], 4294967232 }
  0x60 PF: > { %p15_p9 = scmp.ge.s32.totalorder %s595_s14, 4   ;;  %s685_s9 = smov %s541_s10 }
  0x61   : > { %s686_s10 = smov %s545_s11  ;;  %s687_s11 = smov %s605_s17 }
  0x62   : > { %s688_s12 = smov %s595_s14  ;;  %17 = sbr.rel (!%p15_p9) target bundleno = 5 (0x5), region = 77 }
  0x67   :  { %302 = vsyncpa [#allocation5], 1 }
  0x68   :  { %304 = vsyncpa [#allocation5 + $0x1], 1 }
  0x69   :  { %305 = vsyncpa [#allocation6], 1 }
  0x6a   :  { %307 = vsyncpa [#allocation6 + $0x1], 1 }
  0x6b   :  { %308 = vsyncpa [#allocation9], 1 }

</bundles_post_ra>
